<compile_context>
chip_gen: v6e
topology: v6e:2x2x1
jax: 0.10.0
libtpu: 0.0.40
codegen_flags: <defaults>
</compile_context>

<pallas_src>
import functools

import jax
import jax.numpy as jnp
from jax.experimental import pallas as pl
from jax.experimental.pallas import tpu as pltpu

GAMMA = 2.0
EPSILON = 1e-6
CE_MAX = 1e9
_MAX_TILE_ROWS = 8192


def _round_up(x, m):
    return ((x + m - 1) // m) * m


def _vmem_config():
    """Per-generation VMEM budget: (vmem_limit_bytes, usable_bytes_for_blocks)."""
    vmem_cap = 128 * 1024 * 1024
    try:
        vmem_cap = int(pltpu.get_tpu_info().vmem_capacity_bytes)
    except Exception:
        pass
    if vmem_cap <= 64 * 1024 * 1024:        # v7x-class: 64 MiB per TensorCore
        limit = 44 * 1024 * 1024
    else:                                    # v5e / v6e: 128 MiB physical
        limit = 64 * 1024 * 1024
    usable = (limit * 7) // 10               # headroom for compiler scratch/spills
    return limit, usable


def _tile_rows(c, itemsize, usable_vmem):
    """Max rows per tile, counting the 128-lane padding of narrow blocks."""
    padded_c = max(_round_up(c, 128), 128)
    bytes_per_row = (
        2 * padded_c * itemsize    # logits block, double-buffered by Pallas
        + 2 * padded_c * 4         # f32 (TN, C) intermediates (shifted, exp)
        + 2 * 128 * 4              # (TN, 1) int32 targets block, double-buffered
        + 2 * 128 * 4              # (TN, 1) f32 per-row chain (ce/pt/focal)
        + 2 * 128 * 4              # (TN, 1) f32 output-accumulator block
    )
    return max(8, usable_vmem // bytes_per_row)


def _focal_loss_kernel(logits_ref, targets_ref, out_ref, *, gamma, epsilon,
                       n_total, tiles_per_part):
    t = pl.program_id(1)

    @pl.when(t == 0)
    def _():
        out_ref[...] = jnp.zeros_like(out_ref)

    logits = logits_ref[...].astype(jnp.float32)            # (TN, C)
    tgt = targets_ref[...]                                   # (TN, 1) int32
    tn, c = logits.shape

    # numerically-stable log-softmax pieces; `shifted` reused for the gather
    m = jnp.max(logits, axis=-1, keepdims=True)
    shifted = logits - m
    sumexp = jnp.sum(jnp.exp(shifted), axis=-1, keepdims=True)
    class_ids = jax.lax.broadcasted_iota(jnp.int32, (tn, c), 1)
    tgt_shifted = jnp.sum(jnp.where(class_ids == tgt, shifted, 0.0),
                          axis=-1, keepdims=True)

    # per-sample cross entropy, clamped like the PyTorch reference
    ce = jnp.clip(jnp.log(sumexp) - tgt_shifted, epsilon, CE_MAX)    # (TN, 1)
    pt = jnp.exp(-ce)
    base = jnp.maximum(1.0 - pt, epsilon)
    if gamma == 2.0:
        mod = base * base                        # avoid exp/log pair on the EUP
    else:
        mod = jnp.exp(gamma * jnp.log(base))     # base > 0 after clamp
    focal = mod * ce                             # alpha_t = 1.0

    # mask tail rows of a partial last block and rows of clamped duplicate
    # blocks (logical tile index is computed un-clamped here, so any row past
    # n_total — whatever garbage/duplicate data it holds — contributes zero).
    tile_idx = pl.program_id(0) * tiles_per_part + t
    row_ids = tile_idx * tn + jax.lax.broadcasted_iota(jnp.int32, (tn, 1), 0)
    focal = jnp.where(row_ids < n_total, focal, 0.0)

    out_ref[...] += focal                        # vector accumulator


def focal_loss(logits, targets, *, gamma=GAMMA, epsilon=EPSILON,
               tile_n=None, num_parts=None):
    """logits: (N, C) float, targets: (N,) int — returns scalar mean focal loss."""
    n, c = logits.shape
    itemsize = jnp.dtype(logits.dtype).itemsize
    vmem_limit, usable_vmem = _vmem_config()

    parts_hint = 2 if num_parts is None else max(1, int(num_parts))
    if tile_n is None:
        tile_n = _tile_rows(c, itemsize, usable_vmem)
        tile_n = min(tile_n, _MAX_TILE_ROWS)
        # >= ~4 grid steps per partition so the DMA/compute pipeline has
        # something to hide and tail waste stays bounded.
        tile_n = min(tile_n, pl.cdiv(n, parts_hint * 4))
    tile_n = int(max(8, _round_up(min(int(tile_n), n), 8)))

    num_tiles = pl.cdiv(n, tile_n)
    if num_parts is None:
        # TODO(synk): on single-TC v5e num_parts=1 would avoid the (tiny)
        # duplicated-tile / extra-output-block cost; no robust core-count probe
        # here, so keep 2 (harmless on v6e, needed for v7x megacore).
        num_parts = 2 if num_tiles >= 2 else 1
    num_parts = max(1, min(int(num_parts), num_tiles))
    tiles_per_part = pl.cdiv(num_tiles, num_parts)

    targets2d = targets.astype(jnp.int32).reshape(n, 1)

    last_tile = num_tiles - 1
    if num_parts * tiles_per_part > num_tiles:
        # Grid slots past the last real tile are clamped onto the last valid
        # block (never an out-of-bounds DMA); their rows are masked to zero.
        def in_index_map(p, t):
            return (jnp.minimum(p * tiles_per_part + t, last_tile), 0)
    else:
        def in_index_map(p, t):
            return (p * tiles_per_part + t, 0)

    kernel = functools.partial(
        _focal_loss_kernel, gamma=float(gamma), epsilon=float(epsilon),
        n_total=n, tiles_per_part=tiles_per_part)

    partials = pl.pallas_call(
        kernel,
        out_shape=jax.ShapeDtypeStruct((num_parts * tile_n, 1), jnp.float32),
        grid_spec=pltpu.PrefetchScalarGridSpec(
            num_scalar_prefetch=0,
            grid=(num_parts, tiles_per_part),
            in_specs=[
                pl.BlockSpec((tile_n, c), in_index_map),
                pl.BlockSpec((tile_n, 1), in_index_map),
            ],
            out_specs=pl.BlockSpec((tile_n, 1), lambda p, t: (p, 0)),
        ),
        compiler_params=pltpu.CompilerParams(
            dimension_semantics=("parallel", "arbitrary"),
            vmem_limit_bytes=vmem_limit),
    )(logits, targets2d)

    # single final reduce + mean outside the kernel (divide by the true n)
    return jnp.sum(partials) / n


def _focal_loss_ref(logits, targets, *, gamma=GAMMA, epsilon=EPSILON):
    # pure-JAX reference matching the PyTorch module (alpha=None)
    logp = jax.nn.log_softmax(logits.astype(jnp.float32), axis=-1)
    ce = -jnp.take_along_axis(logp, targets[:, None].astype(jnp.int32), axis=-1)[:, 0]
    ce = jnp.clip(ce, epsilon, CE_MAX)
    pt = jnp.exp(-ce)
    return jnp.mean(jnp.maximum(1.0 - pt, epsilon) ** gamma * ce)


if __name__ == "__main__":
    key = jax.random.PRNGKey(0)
    k1, k2, k3, k4, k5, k6 = jax.random.split(key, 6)

    # small demo shape consistent with the module: (N, C) logits + class ids
    N, C = 16, 8
    logits = jax.random.normal(k1, (N, C), dtype=jnp.float32)
    targets = jax.random.randint(k2, (N,), 0, C, dtype=jnp.int32)
    loss = focal_loss(logits, targets)
    jax.block_until_ready(loss)
    ref = _focal_loss_ref(logits, targets)
    assert jnp.allclose(loss, ref, rtol=1e-5, atol=1e-5), (loss, ref)

    # partial last block (39 % 8 != 0) AND a clamped out-of-range grid slot
    # (5 real tiles on a 2x3 grid) — exercises the un-padded masking paths.
    N2, C2 = 39, 8
    logits2 = jax.random.normal(k3, (N2, C2), dtype=jnp.float32)
    targets2 = jax.random.randint(k4, (N2,), 0, C2, dtype=jnp.int32)
    loss2 = focal_loss(logits2, targets2, tile_n=8)
    jax.block_until_ready(loss2)
    ref2 = _focal_loss_ref(logits2, targets2)
    assert jnp.allclose(loss2, ref2, rtol=1e-5, atol=1e-5), (loss2, ref2)

    # default (auto) tiling with a non-multiple-of-8 batch and non-128 class count
    N3, C3 = 200, 37
    logits3 = jax.random.normal(k5, (N3, C3), dtype=jnp.float32)
    targets3 = jax.random.randint(k6, (N3,), 0, C3, dtype=jnp.int32)
    loss3 = focal_loss(logits3, targets3)
    jax.block_until_ready(loss3)
    ref3 = _focal_loss_ref(logits3, targets3)
    assert jnp.allclose(loss3, ref3, rtol=1e-5, atol=1e-5), (loss3, ref3)

    print("KERNEL_OK")
</pallas_src>

<mosaic_0001>
module attributes {stable_mosaic.version = 11 : i64} {
  func.func @_focal_loss_kernel(%arg0: i32, %arg1: i32, %arg2: memref<8x8xf32, #tpu.memory_space<vmem>>, %arg3: memref<8x1xi32, #tpu.memory_space<vmem>>, %arg4: memref<8x1xf32, #tpu.memory_space<vmem>>) attributes {dimension_semantics = [#tpu.dimension_semantics<parallel>, #tpu.dimension_semantics<arbitrary>], iteration_bounds = array<i64: 2, 1>, scalar_prefetch = 0 : i64, scratch_operands = 0 : i64, tpu.core_type = #tpu.core_type<tc>, window_params = [{transform_indices = @transform_0, window_bounds = array<i64: 8, 8>}, {transform_indices = @transform_1, window_bounds = array<i64: 8, 1>}, {transform_indices = @transform_2, window_bounds = array<i64: 8, 1>}]} {
    %c0_i32 = arith.constant 0 : i32
    %0 = arith.cmpi eq, %arg1, %c0_i32 : i32
    %1 = arith.extui %0 : i1 to i32
    %c0_i32_0 = arith.constant 0 : i32
    %2 = arith.cmpi ne, %1, %c0_i32_0 : i32
    scf.if %2 {
      %cst_17 = arith.constant 0.000000e+00 : f32
      %47 = vector.broadcast %cst_17 : f32 to vector<8x1xf32>
      %c0_18 = arith.constant 0 : index
      %c0_19 = arith.constant 0 : index
      %48 = vector.load %arg4[%c0_18, %c0_19] : memref<8x1xf32, #tpu.memory_space<vmem>>, vector<8x1xf32>
      tpu.vector_store %arg4[%c0_18, %c0_19], %47 {strides = array<i32>} : memref<8x1xf32, #tpu.memory_space<vmem>>, vector<8x1xf32>,
    } else {
    }
    %c0 = arith.constant 0 : index
    %c0_1 = arith.constant 0 : index
    %3 = vector.load %arg2[%c0, %c0_1] : memref<8x8xf32, #tpu.memory_space<vmem>>, vector<8x8xf32>
    %c0_2 = arith.constant 0 : index
    %c0_3 = arith.constant 0 : index
    %4 = vector.load %arg3[%c0_2, %c0_3] : memref<8x1xi32, #tpu.memory_space<vmem>>, vector<8x1xi32>
    %cst = arith.constant dense<0xFF800000> : vector<8xf32>
    %5 = vector.multi_reduction <maximumf>, %3, %cst [1] : vector<8x8xf32> to vector<8xf32>
    %6 = vector.shape_cast %5 : vector<8xf32> to vector<8x1xf32>
    %7 = vector.broadcast %6 : vector<8x1xf32> to vector<8x8xf32>
    %8 = arith.subf %3, %7 : vector<8x8xf32>
    %9 = math.exp %8 : vector<8x8xf32>
    %cst_4 = arith.constant dense<0.000000e+00> : vector<8xf32>
    %10 = vector.multi_reduction <add>, %9, %cst_4 [1] : vector<8x8xf32> to vector<8xf32>
    %11 = vector.shape_cast %10 : vector<8xf32> to vector<8x1xf32>
    %12 = tpu.iota {dimensions = array<i32: 1>} : vector<8x8xi32>
    %13 = vector.broadcast %4 : vector<8x1xi32> to vector<8x8xi32>
    %14 = arith.cmpi eq, %12, %13 : vector<8x8xi32>
    %cst_5 = arith.constant 0.000000e+00 : f32
    %15 = vector.broadcast %cst_5 : f32 to vector<8x8xf32>
    %16 = arith.select %14, %8, %15 : vector<8x8xi1>, vector<8x8xf32>
    %cst_6 = arith.constant dense<0.000000e+00> : vector<8xf32>
    %17 = vector.multi_reduction <add>, %16, %cst_6 [1] : vector<8x8xf32> to vector<8xf32>
    %18 = vector.shape_cast %17 : vector<8xf32> to vector<8x1xf32>
    %19 = math.log %11 : vector<8x1xf32>
    %20 = arith.subf %19, %18 : vector<8x1xf32>
    %cst_7 = arith.constant 9.99999997E-7 : f32
    %cst_8 = arith.constant 1.000000e+09 : f32
    %21 = vector.broadcast %cst_7 : f32 to vector<8x1xf32>
    %22 = arith.maximumf %21, %20 : vector<8x1xf32>
    %23 = vector.broadcast %cst_8 : f32 to vector<8x1xf32>
    %24 = arith.minimumf %23, %22 : vector<8x1xf32>
    %cst_9 = arith.constant 0.000000e+00 : f32
    %25 = vector.broadcast %cst_9 : f32 to vector<8x1xf32>
    %26 = arith.subf %25, %24 : vector<8x1xf32>
    %27 = math.exp %26 : vector<8x1xf32>
    %cst_10 = arith.constant 1.000000e+00 : f32
    %28 = vector.broadcast %cst_10 : f32 to vector<8x1xf32>
    %29 = arith.subf %28, %27 : vector<8x1xf32>
    %cst_11 = arith.constant 9.99999997E-7 : f32
    %30 = vector.broadcast %cst_11 : f32 to vector<8x1xf32>
    %31 = arith.maximumf %29, %30 : vector<8x1xf32>
    %32 = arith.mulf %31, %31 : vector<8x1xf32>
    %33 = arith.mulf %32, %24 : vector<8x1xf32>
    %c1_i32 = arith.constant 1 : i32
    %34 = arith.muli %arg0, %c1_i32 : i32
    %35 = arith.addi %34, %arg1 : i32
    %c8_i32 = arith.constant 8 : i32
    %36 = arith.muli %35, %c8_i32 : i32
    %37 = tpu.iota {dimensions = array<i32: 0>} : vector<8x1xi32>
    %38 = vector.broadcast %36 : i32 to vector<8x1xi32>
    %39 = arith.addi %38, %37 : vector<8x1xi32>
    %c16_i32 = arith.constant 16 : i32
    %40 = vector.broadcast %c16_i32 : i32 to vector<8x1xi32>
    %41 = arith.cmpi slt, %39, %40 : vector<8x1xi32>
    %cst_12 = arith.constant 0.000000e+00 : f32
    %42 = vector.broadcast %cst_12 : f32 to vector<8x1xf32>
    %43 = arith.select %41, %33, %42 : vector<8x1xi1>, vector<8x1xf32>
    %c0_13 = arith.constant 0 : index
    %c0_14 = arith.constant 0 : index
    %44 = vector.load %arg4[%c0_13, %c0_14] : memref<8x1xf32, #tpu.memory_space<vmem>>, vector<8x1xf32>
    %45 = arith.addf %44, %43 : vector<8x1xf32>
    %c0_15 = arith.constant 0 : index
    %c0_16 = arith.constant 0 : index
    %46 = vector.load %arg4[%c0_15, %c0_16] : memref<8x1xf32, #tpu.memory_space<vmem>>, vector<8x1xf32>
    tpu.vector_store %arg4[%c0_15, %c0_16], %45 {strides = array<i32>} : memref<8x1xf32, #tpu.memory_space<vmem>>, vector<8x1xf32>,
    return
  }
  func.func @transform_0(%arg0: i32, %arg1: i32) -> (i32, i32) {
    %c1_i32 = arith.constant 1 : i32
    %0 = arith.muli %arg0, %c1_i32 : i32
    %1 = arith.addi %0, %arg1 : i32
    %c0_i32 = arith.constant 0 : i32
    %c0_i32_0 = arith.constant 0 : i32
    return %1, %c0_i32 : i32, i32
  }
  func.func @transform_1(%arg0: i32, %arg1: i32) -> (i32, i32) {
    %c1_i32 = arith.constant 1 : i32
    %0 = arith.muli %arg0, %c1_i32 : i32
    %1 = arith.addi %0, %arg1 : i32
    %c0_i32 = arith.constant 0 : i32
    %c0_i32_0 = arith.constant 0 : i32
    return %1, %c0_i32 : i32, i32
  }
  func.func @transform_2(%arg0: i32, %arg1: i32) -> (i32, i32) {
    %c0_i32 = arith.constant 0 : i32
    %c0_i32_0 = arith.constant 0 : i32
    return %arg0, %c0_i32 : i32, i32
  }
}

</mosaic_0001>

<bundles_post_ra>
// kernel: tpu_custom_call.1
= control target key start
LH: loop header
LB: loop body
LE: loop exit
PB: predicated region body
PF: predicated region fallthrough
CT: control target
= control target key end

     0   :  { %s392_s9 = smov 0   ;;  %s394_s10 = smov 0   ;;  %s443_s0 = inlined_call_operand.vmem [shape: f32[16,8], index: 0, kind: input, shape index: {}]   ;;  %s444_s1 = inlined_call_operand.vmem [shape: s32[16,1], index: 1, kind: input, shape index: {}]   ;;  %s445_s2 = inlined_call_operand.vmem [shape: f32[16,1], index: 2, kind: output, shape index: {}]  }
   0x1   :  { %s396_s11 = smov 0  }
   0x2 LB: > { %s24_s12 = sadd.s32 1, %s369_s10  ;;  %p311_p0 = scmp.ge.s32.totalorder %s373_s11, 1  ;;  %s373_s11 = sphi %s396_s11, %s12_s11   ;;  %s369_s10 = sphi %s394_s10, %s447_s10   ;;  %s365_s9 = sphi %s392_s9, %s446_s9  }
   0x3   : > { %p26_p1 = scmp.ge.s32.totalorder %s24_s12, 2  ;;  %p140_p2 = scmp.lt.s32.totalorder %s373_s11, 3 }
   0x5   : > { %s449_s12 = smov (%p26_p1, %s24_s12), 0  ;;  %p141_p3 = pnand %p311_p0, %p140_p2 }
   0x6   : > { %p167_p4 = scmp.lt.s32.totalorder (!%p141_p3), %s365_s9, 1  ;;  %s315_s24 = sshll.u32 (!%p141_p3), %s365_s9, 3 }
   0x7   : > { %144 = sbr.rel (%p141_p3) target bundleno = 365 (0x16d), region = 28 }
   0xc   : > { %v375_v0 = vmov 0   ;;  %s168_s13 = scalar_select %p167_p4, %s365_s9, 1  ;;  %vm186_vm0 = vcmask 7168   ;;  %vm190_vm1 = vcmask 64512   ;;  %v376_v1 = vmov 0.0  }
   0xd   : > { %344 = vset.pattern.permute.xlu0 %v375_v0  ;;  %v200_v8 = vlaneseq  ;;  %v226_v25 = vstv %s315_s24 }
   0xe   : > { %s312_s14 = sshll.u32 %s168_s13, 3 }
   0xf   : > { %s170_s17 = scalar_lea.vmem %s443_s0, %s312_s14  ;;  %s420_s20 = scalar_lea.vmem %s445_s2, %s312_s14  ;;  %v201_v9 = vand.u32 127, %v200_v8  ;;  %v225_v24 = vshrl.u32 %v200_v8, 7 }
  0x10   : > { %187 = vst.msk [vmem:[%s420_s20] sm:$0xff] %vm186_vm0, %v376_v1  ;;  %v188_v2 = vld [vmem:[%s170_s17] sm:$0xff]  ;;  %s176_s23 = scalar_lea.vmem %s444_s1, %s312_s14 }
  0x11   : > { %v191_v3 = vsel %vm190_vm1, %v188_v2, -inf  ;;  %v189_v4 = vld [vmem:[%s176_s23] sm:$0xff]  ;;  %v227_v28 = vadd.s32 %v226_v25, %v225_v24 }
  0x12   : > { %192 = vmax.xlane.f32.xlu0 %v191_v3 }
  0x13   : > { %vm228_vm3 = vcmp.lt.s32.totalorder %v227_v28, 16 }
  0x17   : > { %v230_v31 = vld [vmem:[%s420_s20] sm:$0xff] }
  0x28   : > { %203 = vperm.xlu0 %344, %v189_v4  }
  0x9b   : > { %v193_v5 = vpop.xlane.xlu0 %192 }
  0x9c   : > { %v194_v6 = vsub.f32 %v188_v2, %v193_v5 }
  0x9e   : > { %v195_v7 = vmul.f32 1.442695, %v194_v6 }
  0xa0   : > { %345 = vpow2.f32 %v195_v7 }
  0xa3   : > { %v204_v10 = vpop.permute.xlu0 %203 }
  0xa4   : > { %vm205_vm2 = vcmp.eq.s32.totalorder %v201_v9, %v204_v10 }
  0xa5   : > { %v206_v13 = vsel %vm205_vm2, %v194_v6, 0.0 }
  0xa6   : > { %v207_v14 = vsel %vm190_vm1, %v206_v13, 0.0 }
  0xad   : > { %v346_v11 = vpop.eup %345 }
  0xae   : > { %v197_v12 = vsel %vm190_vm1, %v346_v11, 0.0 }
  0xaf   : > { %198 = vadd.xlane.f32.xlu1 %v197_v12 }
  0xb3   : > { %208 = vadd.xlane.f32.xlu1 %v207_v14 }
 0x138   : > { %v199_v15 = vpop.xlane.xlu1 %198 }
 0x139   : > { %347 = vlog2.f32 %v199_v15 }
 0x13c   : > { %v209_v18 = vpop.xlane.xlu1 %208 }
 0x146   : > { %v348_v16 = vpop.eup %347 }
 0x147   : > { %v211_v17 = vmul.f32 0.6931472, %v348_v16 }
 0x149   : > { %v212_v19 = vsub.f32 %v211_v17, %v209_v18 }
 0x14b   : > { %v213_v20 = vmax.f32 %v212_v19, 1e-06 }
 0x14d   : > { %v214_v21 = vmin.f32 %v213_v20, 1e+09 }
 0x14f   : > { %v215_v22 = vsub.f32 0.0, %v214_v21 }
 0x151   : > { %v216_v23 = vmul.f32 1.442695, %v215_v22 }
 0x153   : > { %349 = vpow2.f32 %v216_v23 }
 0x160   : > { %v350_v26 = vpop.eup %349 }
 0x161   : > { %v218_v27 = vsub.f32 1.0, %v350_v26 }
 0x163   : > { %v219_v29 = vmax.f32 %v218_v27, 1e-06 }
 0x165   : > { %v220_v30 = vmul.f32 %v219_v29, %v219_v29 }
 0x167   : > { %v221_v32 = vmul.f32 %v220_v30, %v214_v21 }
 0x169   : > { %v229_v33 = vsel %vm228_vm3, %v221_v32, 0.0 }
 0x16a   : > { %v231_v34 = vadd.f32 %v230_v31, %v229_v33 }
 0x16c   : > { %233 = vst.msk [vmem:[%s420_s20] sm:$0xff] %vm186_vm0, %v231_v34 }
 0x16d PF: > { %s12_s11 = sadd.s32 1, %s373_s11   ;;  %s446_s9 = smov %s369_s10 }
 0x16e   : > { %p9_p5 = scmp.ge.s32.totalorder %s12_s11, 4   ;;  %s447_s10 = smov %s449_s12 }
 0x170   :  { %11 = sbr.rel (!%p9_p5) target bundleno = 2 (0x2), region = 65 }

</bundles_post_ra>
